<compile_context>
chip_gen: v6e
topology: v6e:2x2x1
jax: 0.10.0
libtpu: 0.0.40
codegen_flags: <defaults>
</compile_context>

<pallas_src>
import jax
import jax.numpy as jnp
import numpy as np
from jax.experimental import pallas as pl
from jax.experimental.pallas import tpu as pltpu


def _round_up(x, m):
    return ((x + m - 1) // m) * m


def _gelu_exact(x):
    """nn.GELU() default: 0.5*x*(1+erf(x/sqrt(2))), x is f32.

    erf via Abramowitz & Stegun 7.1.26 (|err| <= 1.5e-7).  The rational term's
    divide is an EUP approx-reciprocal (otherwise-idle slot -> ~free)."""
    a1 = jnp.float32(0.254829592)
    a2 = jnp.float32(-0.284496736)
    a3 = jnp.float32(1.421413741)
    a4 = jnp.float32(-1.453152027)
    a5 = jnp.float32(1.061405429)
    p = jnp.float32(0.3275911)
    z = x * jnp.float32(0.7071067811865476)
    sign = jnp.where(z < 0, jnp.float32(-1.0), jnp.float32(1.0))
    az = jnp.abs(z)
    t = pl.reciprocal(jnp.float32(1.0) + p * az, approx=True)   # EUP
    poly = ((((a5 * t + a4) * t + a3) * t + a2) * t + a1) * t
    erf = sign * (jnp.float32(1.0) - poly * jnp.exp(-az * az))
    return jnp.float32(0.5) * x * (jnp.float32(1.0) + erf)


def projection_head_kernel(x_ref, w1_ref, b1_ref, w2_ref, b2_ref,
                           w3_ref, b3_ref, w4_ref, b4_ref, o_ref, h_ref):
    # Grid = (batch tiles i, out-dim tiles j); j is innermost ("arbitrary").
    # MLP + normalize only depends on i -> compute once per batch tile and
    # cache the normalized bottleneck activations (bf16) in VMEM scratch.
    @pl.when(pl.program_id(1) == 0)
    def _():
        x = x_ref[...]                                           # bf16 [bm, in]
        h = jnp.dot(x, w1_ref[...], preferred_element_type=jnp.float32)
        h = _gelu_exact(h + b1_ref[...])
        h = jnp.dot(h.astype(w2_ref.dtype), w2_ref[...],
                    preferred_element_type=jnp.float32)
        h = _gelu_exact(h + b2_ref[...])
        h = jnp.dot(h.astype(w3_ref.dtype), w3_ref[...],
                    preferred_element_type=jnp.float32) + b3_ref[...]
        # F.normalize(p=2, dim=-1): h / max(||h||, 1e-12) == h * rsqrt(max(ssq, 1e-24))
        ssq = jnp.sum(h * h, axis=-1, keepdims=True)
        inv_norm = jax.lax.rsqrt(jnp.maximum(ssq, jnp.float32(1e-24)))   # EUP
        h_ref[...] = (h * inv_norm).astype(h_ref.dtype)

    # Final (prototype) matmul: stream one N tile of W4 per grid step.
    out = jnp.dot(h_ref[...], w4_ref[...], preferred_element_type=jnp.float32)
    o_ref[...] = (out + b4_ref[...]).astype(o_ref.dtype)


def projection_head(x, params, *, block_m=256, block_n=512,
                    compute_dtype=jnp.bfloat16, single_buffer_weights=True):
    """x: [B, in_dim].  params: dict of pre-transposed f32 weights/biases.

    block_m: batch tile (use 128 on v5e, 256-512 on v6e/v7x).
    block_n: out-dim tile for the final (prototype) matmul.
    """
    B, in_dim = x.shape
    hidden = params["w1"].shape[1]
    bottleneck = params["w3"].shape[1]
    out_dim = params["w4"].shape[1]
    out_dtype = x.dtype

    # ---- tiling (ragged batch / small out_dim handled by padding) --------
    bm = _round_up(min(block_m, _round_up(B, 8)), 8)
    b_pad = _round_up(B, bm)
    bn = _round_up(min(block_n, _round_up(out_dim, 128)), 128)
    n_pad = _round_up(out_dim, bn)
    grid = (b_pad // bm, n_pad // bn)

    # ---- pad + cast operands (layout plumbing outside the kernel) --------
    x_p = jnp.pad(x.astype(compute_dtype), ((0, b_pad - B), (0, 0)))
    w1 = params["w1"].astype(compute_dtype)
    w2 = params["w2"].astype(compute_dtype)
    w3 = params["w3"].astype(compute_dtype)
    w4 = jnp.pad(params["w4"].astype(compute_dtype),
                 ((0, 0), (0, n_pad - out_dim)))
    b1 = params["b1"].astype(jnp.float32)
    b2 = params["b2"].astype(jnp.float32)
    b3 = params["b3"].astype(jnp.float32)
    b4 = jnp.pad(params["b4"].astype(jnp.float32),
                 ((0, 0), (0, n_pad - out_dim)))

    def resident(shape):
        # Fully-resident constants (W1..W3, biases): constant index_map; when
        # supported, single-buffer them (double-buffering is pure VMEM waste).
        kwargs = {}
        if single_buffer_weights:
            kwargs["pipeline_mode"] = pl.Buffered(1)
        return pl.BlockSpec(shape, lambda i, j: (0,) * len(shape), **kwargs)

    in_specs = [
        pl.BlockSpec((bm, in_dim), lambda i, j: (i, 0)),        # x batch tile
        resident((in_dim, hidden)),      resident((1, hidden)),
        resident((hidden, hidden)),      resident((1, hidden)),
        resident((hidden, bottleneck)),  resident((1, bottleneck)),
        pl.BlockSpec((bottleneck, bn), lambda i, j: (0, j)),    # streamed W4
        pl.BlockSpec((1, bn), lambda i, j: (0, j)),             # streamed b4
    ]
    out_spec = pl.BlockSpec((bm, bn), lambda i, j: (i, j))

    # ---- VMEM budget -> explicit scoped limit -----------------------------
    itc = jnp.dtype(compute_dtype).itemsize
    wbuf = 1 if single_buffer_weights else 2
    resident_bytes = wbuf * (itc * (in_dim * hidden + hidden * hidden
                                    + hidden * bottleneck)
                             + 4 * (2 * hidden + bottleneck))
    streamed_bytes = 2 * (itc * (bm * in_dim + bottleneck * bn)
                          + 4 * bn + 4 * bm * bn)
    scratch_bytes = itc * bm * bottleneck
    live_f32 = 4 * bm * max(hidden, bottleneck)
    vmem_needed = resident_bytes + streamed_bytes + scratch_bytes + live_f32
    vmem_limit = int(min(100 * 1024 * 1024,
                         max(32 * 1024 * 1024,
                             int(1.5 * vmem_needed) + (8 << 20))))

    out_padded = pl.pallas_call(
        projection_head_kernel,
        out_shape=jax.ShapeDtypeStruct((b_pad, n_pad), out_dtype),
        grid=grid,
        in_specs=in_specs,
        out_specs=out_spec,
        scratch_shapes=[pltpu.VMEM((bm, bottleneck), compute_dtype)],
        compiler_params=pltpu.CompilerParams(
            dimension_semantics=("parallel", "arbitrary"),
            vmem_limit_bytes=vmem_limit),
    )(x_p, w1, b1, w2, b2, w3, b3, w4, b4)

    return out_padded[:B, :out_dim]


def init_params(key, in_dim, out_dim, hidden_dim, bottleneck_dim):
    """Weights stored as [in, out] (transposed vs PyTorch); biases as [1, out]."""
    dims = [(in_dim, hidden_dim), (hidden_dim, hidden_dim),
            (hidden_dim, bottleneck_dim), (bottleneck_dim, out_dim)]
    params = {}
    keys = jax.random.split(key, 2 * len(dims))
    for i, (din, dout) in enumerate(dims):
        bound = 1.0 / np.sqrt(din)
        params[f"w{i+1}"] = jax.random.uniform(
            keys[2 * i], (din, dout), jnp.float32, -bound, bound)
        params[f"b{i+1}"] = jax.random.uniform(
            keys[2 * i + 1], (1, dout), jnp.float32, -bound, bound)
    return params


def reference_forward(x, params):
    """Pure-JAX f32 reference mirroring the PyTorch module exactly."""
    h = x @ params["w1"] + params["b1"]
    h = jax.nn.gelu(h, approximate=False)
    h = h @ params["w2"] + params["b2"]
    h = jax.nn.gelu(h, approximate=False)
    h = h @ params["w3"] + params["b3"]
    norm = jnp.sqrt(jnp.sum(h * h, axis=-1, keepdims=True))
    h = h / jnp.maximum(norm, 1e-12)
    return h @ params["w4"] + params["b4"]


if __name__ == "__main__":
    # Small shapes consistent with the module (scaled-down hidden dims);
    # batch=12 and out_dim=16 deliberately exercise the padding/slicing paths.
    batch, in_dim, hidden_dim, bottleneck_dim, out_dim = 12, 32, 64, 32, 16

    key = jax.random.PRNGKey(0)
    k_x, k_p = jax.random.split(key)
    x = jax.random.normal(k_x, (batch, in_dim), jnp.float32)
    params = init_params(k_p, in_dim, out_dim, hidden_dim, bottleneck_dim)

    try:
        out = projection_head(x, params)                      # Buffered(1) weights
    except Exception:
        # Some Pallas versions reject pipeline_mode=pl.Buffered(1); fall back
        # to default double-buffered constants (numerics identical).
        out = projection_head(x, params, single_buffer_weights=False)
    out = jax.block_until_ready(out)

    ref = reference_forward(x, params)
    # Tolerance accounts for the intentional bf16-operand / f32-accumulate
    # matmuls (expected abs error << 1e-2 at these shapes).
    np.testing.assert_allclose(np.asarray(out), np.asarray(ref),
                               rtol=2e-2, atol=2e-2)
    print("KERNEL_OK")
</pallas_src>

<mosaic_0001>
module attributes {stable_mosaic.version = 11 : i64} {
  func.func @projection_head_kernel(%arg0: i32, %arg1: i32, %arg2: memref<16x32xbf16, #tpu.memory_space<vmem>>, %arg3: memref<32x64xbf16, #tpu.memory_space<vmem>>, %arg4: memref<1x64xf32, #tpu.memory_space<vmem>>, %arg5: memref<64x64xbf16, #tpu.memory_space<vmem>>, %arg6: memref<1x64xf32, #tpu.memory_space<vmem>>, %arg7: memref<64x32xbf16, #tpu.memory_space<vmem>>, %arg8: memref<1x32xf32, #tpu.memory_space<vmem>>, %arg9: memref<32x128xbf16, #tpu.memory_space<vmem>>, %arg10: memref<1x128xf32, #tpu.memory_space<vmem>>, %arg11: memref<16x128xf32, #tpu.memory_space<vmem>>, %arg12: memref<16x32xbf16, #tpu.memory_space<vmem>>) attributes {dimension_semantics = [#tpu.dimension_semantics<parallel>, #tpu.dimension_semantics<arbitrary>], iteration_bounds = array<i64: 1, 1>, scalar_prefetch = 0 : i64, scratch_operands = 1 : i64, tpu.core_type = #tpu.core_type<tc>, window_params = [{transform_indices = @transform_0, window_bounds = array<i64: 16, 32>}, {pipeline_mode = #tpu.pipeline_mode<synchronous>, transform_indices = @transform_1, window_bounds = array<i64: 32, 64>}, {pipeline_mode = #tpu.pipeline_mode<synchronous>, transform_indices = @transform_2, window_bounds = array<i64: 1, 64>}, {pipeline_mode = #tpu.pipeline_mode<synchronous>, transform_indices = @transform_3, window_bounds = array<i64: 64, 64>}, {pipeline_mode = #tpu.pipeline_mode<synchronous>, transform_indices = @transform_4, window_bounds = array<i64: 1, 64>}, {pipeline_mode = #tpu.pipeline_mode<synchronous>, transform_indices = @transform_5, window_bounds = array<i64: 64, 32>}, {pipeline_mode = #tpu.pipeline_mode<synchronous>, transform_indices = @transform_6, window_bounds = array<i64: 1, 32>}, {transform_indices = @transform_7, window_bounds = array<i64: 32, 128>}, {transform_indices = @transform_8, window_bounds = array<i64: 1, 128>}, {transform_indices = @transform_9, window_bounds = array<i64: 16, 128>}]} {
    %c0_i32 = arith.constant 0 : i32
    %0 = arith.cmpi eq, %arg1, %c0_i32 : i32
    %1 = arith.extui %0 : i1 to i32
    %c0_i32_0 = arith.constant 0 : i32
    %2 = arith.cmpi ne, %1, %c0_i32_0 : i32
    scf.if %2 {
      %c0_8 = arith.constant 0 : index
      %c0_9 = arith.constant 0 : index
      %10 = vector.load %arg2[%c0_8, %c0_9] : memref<16x32xbf16, #tpu.memory_space<vmem>>, vector<16x32xbf16>
      %c0_10 = arith.constant 0 : index
      %c0_11 = arith.constant 0 : index
      %11 = vector.load %arg3[%c0_10, %c0_11] : memref<32x64xbf16, #tpu.memory_space<vmem>>, vector<32x64xbf16>
      %cst_12 = arith.constant dense<0.000000e+00> : vector<16x64xf32>
      %12 = tpu.matmul %10, %11, %cst_12 {dimension_numbers = #tpu.dot_dimension_numbers<[1], [0], [0], [1], [0, 0, 1, 1], [], []>} : vector<16x32xbf16>, vector<32x64xbf16>, vector<16x64xf32> -> vector<16x64xf32>
      %c0_13 = arith.constant 0 : index
      %c0_14 = arith.constant 0 : index
      %13 = vector.load %arg4[%c0_13, %c0_14] : memref<1x64xf32, #tpu.memory_space<vmem>>, vector<1x64xf32>
      %14 = vector.broadcast %13 : vector<1x64xf32> to vector<16x64xf32>
      %15 = arith.addf %12, %14 : vector<16x64xf32>
      %cst_15 = arith.constant 0.707106769 : f32
      %16 = vector.broadcast %cst_15 : f32 to vector<16x64xf32>
      %17 = arith.mulf %15, %16 : vector<16x64xf32>
      %cst_16 = arith.constant 0.000000e+00 : f32
      %18 = vector.broadcast %cst_16 : f32 to vector<16x64xf32>
      %19 = arith.cmpf olt, %17, %18 : vector<16x64xf32>
      %cst_17 = arith.constant -1.000000e+00 : f32
      %cst_18 = arith.constant 1.000000e+00 : f32
      %20 = vector.broadcast %cst_17 : f32 to vector<16x64xf32>
      %21 = vector.broadcast %cst_18 : f32 to vector<16x64xf32>
      %22 = arith.select %19, %20, %21 : vector<16x64xi1>, vector<16x64xf32>
      %23 = math.absf %17 : vector<16x64xf32>
      %cst_19 = arith.constant 0.327591091 : f32
      %24 = vector.broadcast %cst_19 : f32 to vector<16x64xf32>
      %25 = arith.mulf %24, %23 : vector<16x64xf32>
      %cst_20 = arith.constant 1.000000e+00 : f32
      %26 = vector.broadcast %cst_20 : f32 to vector<16x64xf32>
      %27 = arith.addf %26, %25 : vector<16x64xf32>
      %28 = tpu.reciprocal %27 {approx = true} : vector<16x64xf32> -> vector<16x64xf32>
      %cst_21 = arith.constant 1.06140542 : f32
      %29 = vector.broadcast %cst_21 : f32 to vector<16x64xf32>
      %30 = arith.mulf %29, %28 : vector<16x64xf32>
      %cst_22 = arith.constant -1.45315206 : f32
      %31 = vector.broadcast %cst_22 : f32 to vector<16x64xf32>
      %32 = arith.addf %30, %31 : vector<16x64xf32>
      %33 = arith.mulf %32, %28 : vector<16x64xf32>
      %cst_23 = arith.constant 1.42141378 : f32
      %34 = vector.broadcast %cst_23 : f32 to vector<16x64xf32>
      %35 = arith.addf %33, %34 : vector<16x64xf32>
      %36 = arith.mulf %35, %28 : vector<16x64xf32>
      %cst_24 = arith.constant -0.284496725 : f32
      %37 = vector.broadcast %cst_24 : f32 to vector<16x64xf32>
      %38 = arith.addf %36, %37 : vector<16x64xf32>
      %39 = arith.mulf %38, %28 : vector<16x64xf32>
      %cst_25 = arith.constant 0.254829586 : f32
      %40 = vector.broadcast %cst_25 : f32 to vector<16x64xf32>
      %41 = arith.addf %39, %40 : vector<16x64xf32>
      %42 = arith.mulf %41, %28 : vector<16x64xf32>
      %cst_26 = arith.constant 0.000000e+00 : f32
      %43 = vector.broadcast %cst_26 : f32 to vector<16x64xf32>
      %44 = arith.subf %43, %23 : vector<16x64xf32>
      %45 = arith.mulf %44, %23 : vector<16x64xf32>
      %46 = math.exp %45 : vector<16x64xf32>
      %47 = arith.mulf %42, %46 : vector<16x64xf32>
      %cst_27 = arith.constant 1.000000e+00 : f32
      %48 = vector.broadcast %cst_27 : f32 to vector<16x64xf32>
      %49 = arith.subf %48, %47 : vector<16x64xf32>
      %50 = arith.mulf %22, %49 : vector<16x64xf32>
      %cst_28 = arith.constant 5.000000e-01 : f32
      %51 = vector.broadcast %cst_28 : f32 to vector<16x64xf32>
      %52 = arith.mulf %51, %15 : vector<16x64xf32>
      %cst_29 = arith.constant 1.000000e+00 : f32
      %53 = vector.broadcast %cst_29 : f32 to vector<16x64xf32>
      %54 = arith.addf %53, %50 : vector<16x64xf32>
      %55 = arith.mulf %52, %54 : vector<16x64xf32>
      %56 = arith.truncf %55 : vector<16x64xf32> to vector<16x64xbf16>
      %c0_30 = arith.constant 0 : index
      %c0_31 = arith.constant 0 : index
      %57 = vector.load %arg5[%c0_30, %c0_31] : memref<64x64xbf16, #tpu.memory_space<vmem>>, vector<64x64xbf16>
      %cst_32 = arith.constant dense<0.000000e+00> : vector<16x64xf32>
      %58 = tpu.matmul %56, %57, %cst_32 {dimension_numbers = #tpu.dot_dimension_numbers<[1], [0], [0], [1], [0, 0, 1, 1], [], []>} : vector<16x64xbf16>, vector<64x64xbf16>, vector<16x64xf32> -> vector<16x64xf32>
      %c0_33 = arith.constant 0 : index
      %c0_34 = arith.constant 0 : index
      %59 = vector.load %arg6[%c0_33, %c0_34] : memref<1x64xf32, #tpu.memory_space<vmem>>, vector<1x64xf32>
      %60 = vector.broadcast %59 : vector<1x64xf32> to vector<16x64xf32>
      %61 = arith.addf %58, %60 : vector<16x64xf32>
      %cst_35 = arith.constant 0.707106769 : f32
      %62 = vector.broadcast %cst_35 : f32 to vector<16x64xf32>
      %63 = arith.mulf %61, %62 : vector<16x64xf32>
      %cst_36 = arith.constant 0.000000e+00 : f32
      %64 = vector.broadcast %cst_36 : f32 to vector<16x64xf32>
      %65 = arith.cmpf olt, %63, %64 : vector<16x64xf32>
      %cst_37 = arith.constant -1.000000e+00 : f32
      %cst_38 = arith.constant 1.000000e+00 : f32
      %66 = vector.broadcast %cst_37 : f32 to vector<16x64xf32>
      %67 = vector.broadcast %cst_38 : f32 to vector<16x64xf32>
      %68 = arith.select %65, %66, %67 : vector<16x64xi1>, vector<16x64xf32>
      %69 = math.absf %63 : vector<16x64xf32>
      %cst_39 = arith.constant 0.327591091 : f32
      %70 = vector.broadcast %cst_39 : f32 to vector<16x64xf32>
      %71 = arith.mulf %70, %69 : vector<16x64xf32>
      %cst_40 = arith.constant 1.000000e+00 : f32
      %72 = vector.broadcast %cst_40 : f32 to vector<16x64xf32>
      %73 = arith.addf %72, %71 : vector<16x64xf32>
      %74 = tpu.reciprocal %73 {approx = true} : vector<16x64xf32> -> vector<16x64xf32>
      %cst_41 = arith.constant 1.06140542 : f32
      %75 = vector.broadcast %cst_41 : f32 to vector<16x64xf32>
      %76 = arith.mulf %75, %74 : vector<16x64xf32>
      %cst_42 = arith.constant -1.45315206 : f32
      %77 = vector.broadcast %cst_42 : f32 to vector<16x64xf32>
      %78 = arith.addf %76, %77 : vector<16x64xf32>
      %79 = arith.mulf %78, %74 : vector<16x64xf32>
      %cst_43 = arith.constant 1.42141378 : f32
      %80 = vector.broadcast %cst_43 : f32 to vector<16x64xf32>
      %81 = arith.addf %79, %80 : vector<16x64xf32>
      %82 = arith.mulf %81, %74 : vector<16x64xf32>
      %cst_44 = arith.constant -0.284496725 : f32
      %83 = vector.broadcast %cst_44 : f32 to vector<16x64xf32>
      %84 = arith.addf %82, %83 : vector<16x64xf32>
      %85 = arith.mulf %84, %74 : vector<16x64xf32>
      %cst_45 = arith.constant 0.254829586 : f32
      %86 = vector.broadcast %cst_45 : f32 to vector<16x64xf32>
      %87 = arith.addf %85, %86 : vector<16x64xf32>
      %88 = arith.mulf %87, %74 : vector<16x64xf32>
      %cst_46 = arith.constant 0.000000e+00 : f32
      %89 = vector.broadcast %cst_46 : f32 to vector<16x64xf32>
      %90 = arith.subf %89, %69 : vector<16x64xf32>
      %91 = arith.mulf %90, %69 : vector<16x64xf32>
      %92 = math.exp %91 : vector<16x64xf32>
      %93 = arith.mulf %88, %92 : vector<16x64xf32>
      %cst_47 = arith.constant 1.000000e+00 : f32
      %94 = vector.broadcast %cst_47 : f32 to vector<16x64xf32>
      %95 = arith.subf %94, %93 : vector<16x64xf32>
      %96 = arith.mulf %68, %95 : vector<16x64xf32>
      %cst_48 = arith.constant 5.000000e-01 : f32
      %97 = vector.broadcast %cst_48 : f32 to vector<16x64xf32>
      %98 = arith.mulf %97, %61 : vector<16x64xf32>
      %cst_49 = arith.constant 1.000000e+00 : f32
      %99 = vector.broadcast %cst_49 : f32 to vector<16x64xf32>
      %100 = arith.addf %99, %96 : vector<16x64xf32>
      %101 = arith.mulf %98, %100 : vector<16x64xf32>
      %102 = arith.truncf %101 : vector<16x64xf32> to vector<16x64xbf16>
      %c0_50 = arith.constant 0 : index
      %c0_51 = arith.constant 0 : index
      %103 = vector.load %arg7[%c0_50, %c0_51] : memref<64x32xbf16, #tpu.memory_space<vmem>>, vector<64x32xbf16>
      %cst_52 = arith.constant dense<0.000000e+00> : vector<16x32xf32>
      %104 = tpu.matmul %102, %103, %cst_52 {dimension_numbers = #tpu.dot_dimension_numbers<[1], [0], [0], [1], [0, 0, 1, 1], [], []>} : vector<16x64xbf16>, vector<64x32xbf16>, vector<16x32xf32> -> vector<16x32xf32>
      %c0_53 = arith.constant 0 : index
      %c0_54 = arith.constant 0 : index
      %105 = vector.load %arg8[%c0_53, %c0_54] : memref<1x32xf32, #tpu.memory_space<vmem>>, vector<1x32xf32>
      %106 = vector.broadcast %105 : vector<1x32xf32> to vector<16x32xf32>
      %107 = arith.addf %104, %106 : vector<16x32xf32>
      %108 = arith.mulf %107, %107 : vector<16x32xf32>
      %cst_55 = arith.constant dense<0.000000e+00> : vector<16xf32>
      %109 = vector.multi_reduction <add>, %108, %cst_55 [1] : vector<16x32xf32> to vector<16xf32>
      %110 = vector.shape_cast %109 : vector<16xf32> to vector<16x1xf32>
      %cst_56 = arith.constant 1.000000e-24 : f32
      %111 = vector.broadcast %cst_56 : f32 to vector<16x1xf32>
      %112 = arith.maximumf %110, %111 : vector<16x1xf32>
      %113 = math.rsqrt %112 : vector<16x1xf32>
      %114 = vector.broadcast %113 : vector<16x1xf32> to vector<16x32xf32>
      %115 = arith.mulf %107, %114 : vector<16x32xf32>
      %116 = arith.truncf %115 : vector<16x32xf32> to vector<16x32xbf16>
      %c0_57 = arith.constant 0 : index
      %c0_58 = arith.constant 0 : index
      %117 = vector.load %arg12[%c0_57, %c0_58] : memref<16x32xbf16, #tpu.memory_space<vmem>>, vector<16x32xbf16>
      tpu.vector_store %arg12[%c0_57, %c0_58], %116 {strides = array<i32>} : memref<16x32xbf16, #tpu.memory_space<vmem>>, vector<16x32xbf16>,
    } else {
    }
    %c0 = arith.constant 0 : index
    %c0_1 = arith.constant 0 : index
    %3 = vector.load %arg12[%c0, %c0_1] : memref<16x32xbf16, #tpu.memory_space<vmem>>, vector<16x32xbf16>
    %c0_2 = arith.constant 0 : index
    %c0_3 = arith.constant 0 : index
    %4 = vector.load %arg9[%c0_2, %c0_3] : memref<32x128xbf16, #tpu.memory_space<vmem>>, vector<32x128xbf16>
    %cst = arith.constant dense<0.000000e+00> : vector<16x128xf32>
    %5 = tpu.matmul %3, %4, %cst {dimension_numbers = #tpu.dot_dimension_numbers<[1], [0], [0], [1], [0, 0, 1, 1], [], []>} : vector<16x32xbf16>, vector<32x128xbf16>, vector<16x128xf32> -> vector<16x128xf32>
    %c0_4 = arith.constant 0 : index
    %c0_5 = arith.constant 0 : index
    %6 = vector.load %arg10[%c0_4, %c0_5] : memref<1x128xf32, #tpu.memory_space<vmem>>, vector<1x128xf32>
    %7 = vector.broadcast %6 : vector<1x128xf32> to vector<16x128xf32>
    %8 = arith.addf %5, %7 : vector<16x128xf32>
    %c0_6 = arith.constant 0 : index
    %c0_7 = arith.constant 0 : index
    %9 = vector.load %arg11[%c0_6, %c0_7] : memref<16x128xf32, #tpu.memory_space<vmem>>, vector<16x128xf32>
    tpu.vector_store %arg11[%c0_6, %c0_7], %8 {strides = array<i32>} : memref<16x128xf32, #tpu.memory_space<vmem>>, vector<16x128xf32>,
    return
  }
  func.func @transform_0(%arg0: i32, %arg1: i32) -> (i32, i32) {
    %c0_i32 = arith.constant 0 : i32
    %c0_i32_0 = arith.constant 0 : i32
    return %arg0, %c0_i32 : i32, i32
  }
  func.func @transform_1(%arg0: i32, %arg1: i32) -> (i32, i32) {
    %c0_i32 = arith.constant 0 : i32
    %c0_i32_0 = arith.constant 0 : i32
    %c0_i32_1 = arith.constant 0 : i32
    return %c0_i32, %c0_i32_0 : i32, i32
  }
  func.func @transform_2(%arg0: i32, %arg1: i32) -> (i32, i32) {
    %c0_i32 = arith.constant 0 : i32
    %c0_i32_0 = arith.constant 0 : i32
    %c0_i32_1 = arith.constant 0 : i32
    return %c0_i32, %c0_i32_0 : i32, i32
  }
  func.func @transform_3(%arg0: i32, %arg1: i32) -> (i32, i32) {
    %c0_i32 = arith.constant 0 : i32
    %c0_i32_0 = arith.constant 0 : i32
    %c0_i32_1 = arith.constant 0 : i32
    return %c0_i32, %c0_i32_0 : i32, i32
  }
  func.func @transform_4(%arg0: i32, %arg1: i32) -> (i32, i32) {
    %c0_i32 = arith.constant 0 : i32
    %c0_i32_0 = arith.constant 0 : i32
    %c0_i32_1 = arith.constant 0 : i32
    return %c0_i32, %c0_i32_0 : i32, i32
  }
  func.func @transform_5(%arg0: i32, %arg1: i32) -> (i32, i32) {
    %c0_i32 = arith.constant 0 : i32
    %c0_i32_0 = arith.constant 0 : i32
    %c0_i32_1 = arith.constant 0 : i32
    return %c0_i32, %c0_i32_0 : i32, i32
  }
  func.func @transform_6(%arg0: i32, %arg1: i32) -> (i32, i32) {
    %c0_i32 = arith.constant 0 : i32
    %c0_i32_0 = arith.constant 0 : i32
    %c0_i32_1 = arith.constant 0 : i32
    return %c0_i32, %c0_i32_0 : i32, i32
  }
  func.func @transform_7(%arg0: i32, %arg1: i32) -> (i32, i32) {
    %c0_i32 = arith.constant 0 : i32
    %c0_i32_0 = arith.constant 0 : i32
    return %c0_i32, %arg1 : i32, i32
  }
  func.func @transform_8(%arg0: i32, %arg1: i32) -> (i32, i32) {
    %c0_i32 = arith.constant 0 : i32
    %c0_i32_0 = arith.constant 0 : i32
    return %c0_i32, %arg1 : i32, i32
  }
  func.func @transform_9(%arg0: i32, %arg1: i32) -> (i32, i32) {
    %c0_i32 = arith.constant 0 : i32
    return %arg0, %arg1 : i32, i32
  }
}

module attributes {stable_mosaic.version = 11 : i64} {
  func.func @projection_head_kernel(%arg0: i32, %arg1: i32, %arg2: memref<16x32xbf16, #tpu.memory_space<vmem>>, %arg3: memref<32x64xbf16, #tpu.memory_space<vmem>>, %arg4: memref<1x64xf32, #tpu.memory_space<vmem>>, %arg5: memref<64x64xbf16, #tpu.memory_space<vmem>>, %arg6: memref<1x64xf32, #tpu.memory_space<vmem>>, %arg7: memref<64x32xbf16, #tpu.memory_space<vmem>>, %arg8: memref<1x32xf32, #tpu.memory_space<vmem>>, %arg9: memref<32x128xbf16, #tpu.memory_space<vmem>>, %arg10: memref<1x128xf32, #tpu.memory_space<vmem>>, %arg11: memref<16x128xf32, #tpu.memory_space<vmem>>, %arg12: memref<16x32xbf16, #tpu.memory_space<vmem>>) attributes {dimension_semantics = [#tpu.dimension_semantics<parallel>, #tpu.dimension_semantics<arbitrary>], iteration_bounds = array<i64: 1, 1>, scalar_prefetch = 0 : i64, scratch_operands = 1 : i64, tpu.core_type = #tpu.core_type<tc>, window_params = [{transform_indices = @transform_0, window_bounds = array<i64: 16, 32>}, {pipeline_mode = #tpu.pipeline_mode<synchronous>, transform_indices = @transform_1, window_bounds = array<i64: 32, 64>}, {pipeline_mode = #tpu.pipeline_mode<synchronous>, transform_indices = @transform_2, window_bounds = array<i64: 1, 64>}, {pipeline_mode = #tpu.pipeline_mode<synchronous>, transform_indices = @transform_3, window_bounds = array<i64: 64, 64>}, {pipeline_mode = #tpu.pipeline_mode<synchronous>, transform_indices = @transform_4, window_bounds = array<i64: 1, 64>}, {pipeline_mode = #tpu.pipeline_mode<synchronous>, transform_indices = @transform_5, window_bounds = array<i64: 64, 32>}, {pipeline_mode = #tpu.pipeline_mode<synchronous>, transform_indices = @transform_6, window_bounds = array<i64: 1, 32>}, {transform_indices = @transform_7, window_bounds = array<i64: 32, 128>}, {transform_indices = @transform_8, window_bounds = array<i64: 1, 128>}, {transform_indices = @transform_9, window_bounds = array<i64: 16, 128>}]} {
    %c0_i32 = arith.constant 0 : i32
    %0 = arith.cmpi eq, %arg1, %c0_i32 : i32
    %1 = arith.extui %0 : i1 to i32
    %c0_i32_0 = arith.constant 0 : i32
    %2 = arith.cmpi ne, %1, %c0_i32_0 : i32
    scf.if %2 {
      %c0_8 = arith.constant 0 : index
      %c0_9 = arith.constant 0 : index
      %10 = vector.load %arg2[%c0_8, %c0_9] : memref<16x32xbf16, #tpu.memory_space<vmem>>, vector<16x32xbf16>
      %c0_10 = arith.constant 0 : index
      %c0_11 = arith.constant 0 : index
      %11 = vector.load %arg3[%c0_10, %c0_11] : memref<32x64xbf16, #tpu.memory_space<vmem>>, vector<32x64xbf16>
      %cst_12 = arith.constant dense<0.000000e+00> : vector<16x64xf32>
      %12 = tpu.matmul %10, %11, %cst_12 {dimension_numbers = #tpu.dot_dimension_numbers<[1], [0], [0], [1], [0, 0, 1, 1], [], []>} : vector<16x32xbf16>, vector<32x64xbf16>, vector<16x64xf32> -> vector<16x64xf32>
      %c0_13 = arith.constant 0 : index
      %c0_14 = arith.constant 0 : index
      %13 = vector.load %arg4[%c0_13, %c0_14] : memref<1x64xf32, #tpu.memory_space<vmem>>, vector<1x64xf32>
      %14 = vector.broadcast %13 : vector<1x64xf32> to vector<16x64xf32>
      %15 = arith.addf %12, %14 : vector<16x64xf32>
      %cst_15 = arith.constant 0.707106769 : f32
      %16 = vector.broadcast %cst_15 : f32 to vector<16x64xf32>
      %17 = arith.mulf %15, %16 : vector<16x64xf32>
      %cst_16 = arith.constant 0.000000e+00 : f32
      %18 = vector.broadcast %cst_16 : f32 to vector<16x64xf32>
      %19 = arith.cmpf olt, %17, %18 : vector<16x64xf32>
      %cst_17 = arith.constant -1.000000e+00 : f32
      %cst_18 = arith.constant 1.000000e+00 : f32
      %20 = vector.broadcast %cst_17 : f32 to vector<16x64xf32>
      %21 = vector.broadcast %cst_18 : f32 to vector<16x64xf32>
      %22 = arith.select %19, %20, %21 : vector<16x64xi1>, vector<16x64xf32>
      %23 = math.absf %17 : vector<16x64xf32>
      %cst_19 = arith.constant 0.327591091 : f32
      %24 = vector.broadcast %cst_19 : f32 to vector<16x64xf32>
      %25 = arith.mulf %24, %23 : vector<16x64xf32>
      %cst_20 = arith.constant 1.000000e+00 : f32
      %26 = vector.broadcast %cst_20 : f32 to vector<16x64xf32>
      %27 = arith.addf %26, %25 : vector<16x64xf32>
      %28 = tpu.reciprocal %27 {approx = true} : vector<16x64xf32> -> vector<16x64xf32>
      %cst_21 = arith.constant 1.06140542 : f32
      %29 = vector.broadcast %cst_21 : f32 to vector<16x64xf32>
      %30 = arith.mulf %29, %28 : vector<16x64xf32>
      %cst_22 = arith.constant -1.45315206 : f32
      %31 = vector.broadcast %cst_22 : f32 to vector<16x64xf32>
      %32 = arith.addf %30, %31 : vector<16x64xf32>
      %33 = arith.mulf %32, %28 : vector<16x64xf32>
      %cst_23 = arith.constant 1.42141378 : f32
      %34 = vector.broadcast %cst_23 : f32 to vector<16x64xf32>
      %35 = arith.addf %33, %34 : vector<16x64xf32>
      %36 = arith.mulf %35, %28 : vector<16x64xf32>
      %cst_24 = arith.constant -0.284496725 : f32
      %37 = vector.broadcast %cst_24 : f32 to vector<16x64xf32>
      %38 = arith.addf %36, %37 : vector<16x64xf32>
      %39 = arith.mulf %38, %28 : vector<16x64xf32>
      %cst_25 = arith.constant 0.254829586 : f32
      %40 = vector.broadcast %cst_25 : f32 to vector<16x64xf32>
      %41 = arith.addf %39, %40 : vector<16x64xf32>
      %42 = arith.mulf %41, %28 : vector<16x64xf32>
      %cst_26 = arith.constant 0.000000e+00 : f32
      %43 = vector.broadcast %cst_26 : f32 to vector<16x64xf32>
      %44 = arith.subf %43, %23 : vector<16x64xf32>
      %45 = arith.mulf %44, %23 : vector<16x64xf32>
      %46 = math.exp %45 : vector<16x64xf32>
      %47 = arith.mulf %42, %46 : vector<16x64xf32>
      %cst_27 = arith.constant 1.000000e+00 : f32
      %48 = vector.broadcast %cst_27 : f32 to vector<16x64xf32>
      %49 = arith.subf %48, %47 : vector<16x64xf32>
      %50 = arith.mulf %22, %49 : vector<16x64xf32>
      %cst_28 = arith.constant 5.000000e-01 : f32
      %51 = vector.broadcast %cst_28 : f32 to vector<16x64xf32>
      %52 = arith.mulf %51, %15 : vector<16x64xf32>
      %cst_29 = arith.constant 1.000000e+00 : f32
      %53 = vector.broadcast %cst_29 : f32 to vector<16x64xf32>
      %54 = arith.addf %53, %50 : vector<16x64xf32>
      %55 = arith.mulf %52, %54 : vector<16x64xf32>
      %56 = arith.truncf %55 : vector<16x64xf32> to vector<16x64xbf16>
      %c0_30 = arith.constant 0 : index
      %c0_31 = arith.constant 0 : index
      %57 = vector.load %arg5[%c0_30, %c0_31] : memref<64x64xbf16, #tpu.memory_space<vmem>>, vector<64x64xbf16>
      %cst_32 = arith.constant dense<0.000000e+00> : vector<16x64xf32>
      %58 = tpu.matmul %56, %57, %cst_32 {dimension_numbers = #tpu.dot_dimension_numbers<[1], [0], [0], [1], [0, 0, 1, 1], [], []>} : vector<16x64xbf16>, vector<64x64xbf16>, vector<16x64xf32> -> vector<16x64xf32>
      %c0_33 = arith.constant 0 : index
      %c0_34 = arith.constant 0 : index
      %59 = vector.load %arg6[%c0_33, %c0_34] : memref<1x64xf32, #tpu.memory_space<vmem>>, vector<1x64xf32>
      %60 = vector.broadcast %59 : vector<1x64xf32> to vector<16x64xf32>
      %61 = arith.addf %58, %60 : vector<16x64xf32>
      %cst_35 = arith.constant 0.707106769 : f32
      %62 = vector.broadcast %cst_35 : f32 to vector<16x64xf32>
      %63 = arith.mulf %61, %62 : vector<16x64xf32>
      %cst_36 = arith.constant 0.000000e+00 : f32
      %64 = vector.broadcast %cst_36 : f32 to vector<16x64xf32>
      %65 = arith.cmpf olt, %63, %64 : vector<16x64xf32>
      %cst_37 = arith.constant -1.000000e+00 : f32
      %cst_38 = arith.constant 1.000000e+00 : f32
      %66 = vector.broadcast %cst_37 : f32 to vector<16x64xf32>
      %67 = vector.broadcast %cst_38 : f32 to vector<16x64xf32>
      %68 = arith.select %65, %66, %67 : vector<16x64xi1>, vector<16x64xf32>
      %69 = math.absf %63 : vector<16x64xf32>
      %cst_39 = arith.constant 0.327591091 : f32
      %70 = vector.broadcast %cst_39 : f32 to vector<16x64xf32>
      %71 = arith.mulf %70, %69 : vector<16x64xf32>
      %cst_40 = arith.constant 1.000000e+00 : f32
      %72 = vector.broadcast %cst_40 : f32 to vector<16x64xf32>
      %73 = arith.addf %72, %71 : vector<16x64xf32>
      %74 = tpu.reciprocal %73 {approx = true} : vector<16x64xf32> -> vector<16x64xf32>
      %cst_41 = arith.constant 1.06140542 : f32
      %75 = vector.broadcast %cst_41 : f32 to vector<16x64xf32>
      %76 = arith.mulf %75, %74 : vector<16x64xf32>
      %cst_42 = arith.constant -1.45315206 : f32
      %77 = vector.broadcast %cst_42 : f32 to vector<16x64xf32>
      %78 = arith.addf %76, %77 : vector<16x64xf32>
      %79 = arith.mulf %78, %74 : vector<16x64xf32>
      %cst_43 = arith.constant 1.42141378 : f32
      %80 = vector.broadcast %cst_43 : f32 to vector<16x64xf32>
      %81 = arith.addf %79, %80 : vector<16x64xf32>
      %82 = arith.mulf %81, %74 : vector<16x64xf32>
      %cst_44 = arith.constant -0.284496725 : f32
      %83 = vector.broadcast %cst_44 : f32 to vector<16x64xf32>
      %84 = arith.addf %82, %83 : vector<16x64xf32>
      %85 = arith.mulf %84, %74 : vector<16x64xf32>
      %cst_45 = arith.constant 0.254829586 : f32
      %86 = vector.broadcast %cst_45 : f32 to vector<16x64xf32>
      %87 = arith.addf %85, %86 : vector<16x64xf32>
      %88 = arith.mulf %87, %74 : vector<16x64xf32>
      %cst_46 = arith.constant 0.000000e+00 : f32
      %89 = vector.broadcast %cst_46 : f32 to vector<16x64xf32>
      %90 = arith.subf %89, %69 : vector<16x64xf32>
      %91 = arith.mulf %90, %69 : vector<16x64xf32>
      %92 = math.exp %91 : vector<16x64xf32>
      %93 = arith.mulf %88, %92 : vector<16x64xf32>
      %cst_47 = arith.constant 1.000000e+00 : f32
      %94 = vector.broadcast %cst_47 : f32 to vector<16x64xf32>
      %95 = arith.subf %94, %93 : vector<16x64xf32>
      %96 = arith.mulf %68, %95 : vector<16x64xf32>
      %cst_48 = arith.constant 5.000000e-01 : f32
      %97 = vector.broadcast %cst_48 : f32 to vector<16x64xf32>
      %98 = arith.mulf %97, %61 : vector<16x64xf32>
      %cst_49 = arith.constant 1.000000e+00 : f32
      %99 = vector.broadcast %cst_49 : f32 to vector<16x64xf32>
      %100 = arith.addf %99, %96 : vector<16x64xf32>
      %101 = arith.mulf %98, %100 : vector<16x64xf32>
      %102 = arith.truncf %101 : vector<16x64xf32> to vector<16x64xbf16>
      %c0_50 = arith.constant 0 : index
      %c0_51 = arith.constant 0 : index
      %103 = vector.load %arg7[%c0_50, %c0_51] : memref<64x32xbf16, #tpu.memory_space<vmem>>, vector<64x32xbf16>
      %cst_52 = arith.constant dense<0.000000e+00> : vector<16x32xf32>
      %104 = tpu.matmul %102, %103, %cst_52 {dimension_numbers = #tpu.dot_dimension_numbers<[1], [0], [0], [1], [0, 0, 1, 1], [], []>} : vector<16x64xbf16>, vector<64x32xbf16>, vector<16x32xf32> -> vector<16x32xf32>
      %c0_53 = arith.constant 0 : index
      %c0_54 = arith.constant 0 : index
      %105 = vector.load %arg8[%c0_53, %c0_54] : memref<1x32xf32, #tpu.memory_space<vmem>>, vector<1x32xf32>
      %106 = vector.broadcast %105 : vector<1x32xf32> to vector<16x32xf32>
      %107 = arith.addf %104, %106 : vector<16x32xf32>
      %108 = arith.mulf %107, %107 : vector<16x32xf32>
      %cst_55 = arith.constant dense<0.000000e+00> : vector<16xf32>
      %109 = vector.multi_reduction <add>, %108, %cst_55 [1] : vector<16x32xf32> to vector<16xf32>
      %110 = vector.shape_cast %109 : vector<16xf32> to vector<16x1xf32>
      %cst_56 = arith.constant 1.000000e-24 : f32
      %111 = vector.broadcast %cst_56 : f32 to vector<16x1xf32>
      %112 = arith.maximumf %110, %111 : vector<16x1xf32>
      %113 = math.rsqrt %112 : vector<16x1xf32>
      %114 = vector.broadcast %113 : vector<16x1xf32> to vector<16x32xf32>
      %115 = arith.mulf %107, %114 : vector<16x32xf32>
      %116 = arith.truncf %115 : vector<16x32xf32> to vector<16x32xbf16>
      %c0_57 = arith.constant 0 : index
      %c0_58 = arith.constant 0 : index
      %117 = vector.load %arg12[%c0_57, %c0_58] : memref<16x32xbf16, #tpu.memory_space<vmem>>, vector<16x32xbf16>
      tpu.vector_store %arg12[%c0_57, %c0_58], %116 {strides = array<i32>} : memref<16x32xbf16, #tpu.memory_space<vmem>>, vector<16x32xbf16>,
    } else {
    }
    %c0 = arith.constant 0 : index
    %c0_1 = arith.constant 0 : index
    %3 = vector.load %arg12[%c0, %c0_1] : memref<16x32xbf16, #tpu.memory_space<vmem>>, vector<16x32xbf16>
    %c0_2 = arith.constant 0 : index
    %c0_3 = arith.constant 0 : index
    %4 = vector.load %arg9[%c0_2, %c0_3] : memref<32x128xbf16, #tpu.memory_space<vmem>>, vector<32x128xbf16>
    %cst = arith.constant dense<0.000000e+00> : vector<16x128xf32>
    %5 = tpu.matmul %3, %4, %cst {dimension_numbers = #tpu.dot_dimension_numbers<[1], [0], [0], [1], [0, 0, 1, 1], [], []>} : vector<16x32xbf16>, vector<32x128xbf16>, vector<16x128xf32> -> vector<16x128xf32>
    %c0_4 = arith.constant 0 : index
    %c0_5 = arith.constant 0 : index
    %6 = vector.load %arg10[%c0_4, %c0_5] : memref<1x128xf32, #tpu.memory_space<vmem>>, vector<1x128xf32>
    %7 = vector.broadcast %6 : vector<1x128xf32> to vector<16x128xf32>
    %8 = arith.addf %5, %7 : vector<16x128xf32>
    %c0_6 = arith.constant 0 : index
    %c0_7 = arith.constant 0 : index
    %9 = vector.load %arg11[%c0_6, %c0_7] : memref<16x128xf32, #tpu.memory_space<vmem>>, vector<16x128xf32>
    tpu.vector_store %arg11[%c0_6, %c0_7], %8 {strides = array<i32>} : memref<16x128xf32, #tpu.memory_space<vmem>>, vector<16x128xf32>,
    return
  }
  func.func @transform_0(%arg0: i32, %arg1: i32) -> (i32, i32) {
    %c0_i32 = arith.constant 0 : i32
    %c0_i32_0 = arith.constant 0 : i32
    return %arg0, %c0_i32 : i32, i32
  }
  func.func @transform_1(%arg0: i32, %arg1: i32) -> (i32, i32) {
    %c0_i32 = arith.constant 0 : i32
    %c0_i32_0 = arith.constant 0 : i32
    %c0_i32_1 = arith.constant 0 : i32
    return %c0_i32, %c0_i32_0 : i32, i32
  }
  func.func @transform_2(%arg0: i32, %arg1: i32) -> (i32, i32) {
    %c0_i32 = arith.constant 0 : i32
    %c0_i32_0 = arith.constant 0 : i32
    %c0_i32_1 = arith.constant 0 : i32
    return %c0_i32, %c0_i32_0 : i32, i32
  }
  func.func @transform_3(%arg0: i32, %arg1: i32) -> (i32, i32) {
    %c0_i32 = arith.constant 0 : i32
    %c0_i32_0 = arith.constant 0 : i32
    %c0_i32_1 = arith.constant 0 : i32
    return %c0_i32, %c0_i32_0 : i32, i32
  }
  func.func @transform_4(%arg0: i32, %arg1: i32) -> (i32, i32) {
    %c0_i32 = arith.constant 0 : i32
    %c0_i32_0 = arith.constant 0 : i32
    %c0_i32_1 = arith.constant 0 : i32
    return %c0_i32, %c0_i32_0 : i32, i32
  }
  func.func @transform_5(%arg0: i32, %arg1: i32) -> (i32, i32) {
    %c0_i32 = arith.constant 0 : i32
    %c0_i32_0 = arith.constant 0 : i32
    %c0_i32_1 = arith.constant 0 : i32
    return %c0_i32, %c0_i32_0 : i32, i32
  }
  func.func @transform_6(%arg0: i32, %arg1: i32) -> (i32, i32) {
    %c0_i32 = arith.constant 0 : i32
    %c0_i32_0 = arith.constant 0 : i32
    %c0_i32_1 = arith.constant 0 : i32
    return %c0_i32, %c0_i32_0 : i32, i32
  }
  func.func @transform_7(%arg0: i32, %arg1: i32) -> (i32, i32) {
    %c0_i32 = arith.constant 0 : i32
    %c0_i32_0 = arith.constant 0 : i32
    return %c0_i32, %arg1 : i32, i32
  }
  func.func @transform_8(%arg0: i32, %arg1: i32) -> (i32, i32) {
    %c0_i32 = arith.constant 0 : i32
    %c0_i32_0 = arith.constant 0 : i32
    return %c0_i32, %arg1 : i32, i32
  }
  func.func @transform_9(%arg0: i32, %arg1: i32) -> (i32, i32) {
    %c0_i32 = arith.constant 0 : i32
    return %arg0, %arg1 : i32, i32
  }
}

</mosaic_0001>

<bundles_post_ra>
// kernel: tpu_custom_call.1
= control target key start
LH: loop header
LB: loop body
LE: loop exit
PB: predicated region body
PF: predicated region fallthrough
CT: control target
= control target key end

     0   :  { %14 = vsyncpa [#allocation4], 0  ;;  %s867_s0 = inlined_call_operand.hbm [shape: bf16[16,32], index: 0, kind: input, shape index: {}]   ;;  %s868_s1 = inlined_call_operand.vmem [shape: bf16[32,64], index: 1, kind: input, shape index: {}]   ;;  %s869_s2 = inlined_call_operand.vmem [shape: f32[1,64], index: 2, kind: input, shape index: {}]   ;;  %s870_s3 = inlined_call_operand.vmem [shape: bf16[64,64], index: 3, kind: input, shape index: {}]   ;;  %s871_s4 = inlined_call_operand.vmem [shape: f32[1,64], index: 4, kind: input, shape index: {}]   ;;  %s872_s5 = inlined_call_operand.vmem [shape: bf16[64,32], index: 5, kind: input, shape index: {}]   ;;  %s873_s6 = inlined_call_operand.vmem [shape: f32[1,32], index: 6, kind: input, shape index: {}]   ;;  %s874_s7 = inlined_call_operand.hbm [shape: bf16[32,128], index: 7, kind: input, shape index: {}]   ;;  %s875_s8 = inlined_call_operand.vmem [shape: f32[1,128], index: 8, kind: input, shape index: {}]   ;;  %s876_s9 = inlined_call_operand.hbm [shape: f32[16,128], index: 9, kind: output, shape index: {}]  }
   0x1   :  { %15 = vsyncpa [#allocation7], 0 }
   0x2   :  { %16 = vsyncpa [#allocation5], 0  ;;  %s726_s30 = smov [#allocation3]  }
   0x3   :  { %s22_s10 = sshll.u32 %s726_s30, 4  ;;  %s23_s10 = int_to_ptr.vmem [resolvable:$true] %s22_s10 }
   0x4   :  { %s668_s11 = scalar_lea.vmem %s23_s10, 128  ;;  %p673_p1 = scmp.lt.s32.totalorder %s23_s10, %s23_s10 }
   0x5   :  { %p669_p0 = scmp.ne.s32.totalorder %s23_s10, %s668_s11  ;;  %p674_p2 = scmp.lt.s32.totalorder %s668_s11, %s668_s11 }
   0x7   :  { %p675_p3 = por %p674_p2, %p673_p1 }
   0x9   :  { %p676_p4 = pnand %p675_p3, %p669_p0 }
   0xb   :  { %679 = shalt.err (!%p676_p4)
}
   0xc   :  { %s727_s12 = smov 64   ;;  %s728_s13 = smov 4  }
   0xd   :  { %28 = dma.hbm_to_vmem [thread:$0]  %s867_s0, 128, %s23_s10, [#allocation4], %s727_s12, %s727_s12, %s728_s13  }
   0xe   :  { %s729_s16 = smov [#allocation6]  }
   0xf   :  { %s46_s17 = sshll.u32 %s729_s16, 4  ;;  %s47_s17 = int_to_ptr.vmem [resolvable:$true] %s46_s17 }
  0x10   :  { %s688_s18 = scalar_lea.vmem %s47_s17, 256  ;;  %p693_p6 = scmp.lt.s32.totalorder %s47_s17, %s47_s17 }
  0x11   :  { %p689_p5 = scmp.ne.s32.totalorder %s47_s17, %s688_s18  ;;  %p694_p7 = scmp.lt.s32.totalorder %s688_s18, %s688_s18 }
  0x13   :  { %p695_p8 = por %p694_p7, %p693_p6 }
  0x15   :  { %p696_p9 = pnand %p695_p8, %p689_p5 }
  0x17   :  { %699 = shalt.err (!%p696_p9)
}
  0x18   :  { %52 = dma.hbm_to_vmem [thread:$0]  %s874_s7, 256, %s47_s17, [#allocation7], %s727_s12, %s727_s12, %s728_s13  }
  0x19   :  { %720 = dma.done.wait [#allocation4], 128  }
  0x1a   :  { %721 = vsyncadd [#allocation4], 4294967168 }
  0x1b   :  { %722 = dma.done.wait [#allocation7], 256  }
  0x1c   :  { %723 = vsyncadd [#allocation7], 4294967040  ;;  %v730_v0 = vmov 0.0   ;;  %vm731_vm0 = vmmov 0   ;;  %v626_v1 = vld [vmem:[%s868_s1 + $0x8] sm:$0xff]   ;;  %v627_v2 = vld [vmem:[%s868_s1] sm:$0xff]  }
  0x1d   :  { %576 = vmatprep.subr.bf16.mxu0 %v730_v0  ;;  %580 = vmatprep.mubr.msk.bf16.mxu0 %vm731_vm0, %v730_v0  ;;  %v628_v3 = vld [vmem:[#allocation3] sm:$0xff]   ;;  %vm96_vm1 = vcmask 261120   ;;  %v629_v4 = vld [vmem:[%s870_s3 + $0x18] sm:$0xff]   ;;  %v630_v5 = vld [vmem:[%s870_s3 + $0x10] sm:$0xff]   ;;  %v732_v53 = vmov 1.0   ;;  %vm233_vm4 = vcmask 523264  }
  0x1e   :  { %584 = vmatprep.subr.bf16.mxu1 %v730_v0  ;;  %592 = vmatprep.mubr.msk.bf16.mxu1 %vm731_vm0, %v730_v0  ;;  %v631_v6 = vld [vmem:[%s870_s3 + $0x8] sm:$0xff]   ;;  %v632_v7 = vld [vmem:[%s870_s3] sm:$0xff]   ;;  %vm436_vm7 = vcmask 257024   ;;  %s733_s20 = smov [#allocation8]  }
  0x1f   :  { %577 = vmatpush3.bf16.msra.mxu0 %v626_v1  ;;  %585 = vmatpush3.bf16.msra.mxu1 %v629_v4  ;;  %v534_v8 = vld [vmem:[%s869_s2] ss:$0 sm:$0xff]  ;;  %v633_v4 = vld [vmem:[%s872_s5 + $0x18] sm:$0xff]   ;;  %s521_s0 = sshll.u32 %s733_s20, 4  ;;  %s522_s0 = int_to_ptr.vmem [resolvable:$true] %s521_s0 }
  0x20   :  { %578 = vmatprep.subr.bf16.mxu0 %v730_v0  ;;  %586 = vmatprep.subr.bf16.mxu1 %v730_v0  ;;  %s700_s21 = scalar_lea.vmem %s522_s0, 256  ;;  %p705_p11 = scmp.lt.s32.totalorder %s522_s0, %s522_s0 }
  0x21   :  { %p701_p10 = scmp.ne.s32.totalorder %s522_s0, %s700_s21  ;;  %p706_p12 = scmp.lt.s32.totalorder %s700_s21, %s700_s21 }
  0x23   :  { %579 = vmatpush3.bf16.msra.mxu0 %v627_v2  ;;  %587 = vmatpush3.bf16.msra.mxu1 %v630_v5  ;;  %v634_v5 = vld [vmem:[%s872_s5 + $0x10] sm:$0xff]   ;;  %p707_p13 = por %p706_p12, %p705_p11 }
  0x24   :  { %596 = vmatprep.subr.bf16.mxu0 %v730_v0  ;;  %588 = vmatprep.subr.bf16.mxu1 %v730_v0 }
  0x25   :  { %p708_p0 = pnand %p707_p13, %p701_p10 }
  0x26   :  { %581 = vmatmul.mubr.msk.bf16.vlgmr.msra.gmra.mxu0 %vm96_vm1, %v628_v3 }
  0x27   :  { %604 = vmatprep.mubr.msk.bf16.mxu0 %vm731_vm0, %v730_v0  ;;  %589 = vmatpush3.bf16.msra.mxu1 %v631_v6  ;;  %v635_v6 = vld [vmem:[%s872_s5 + $0x8] sm:$0xff]  }
  0x28   :  { %590 = vmatprep.subr.bf16.mxu1 %v730_v0  ;;  %597 = vmatpush3.bf16.msra.mxu0 %v633_v4  ;;  %v545_v4 = vld [vmem:[%s873_s6] ss:$0 sm:$0xff] }
  0x29   :  { %598 = vmatprep.subr.bf16.mxu0 %v730_v0 }
  0x2b   :  { %591 = vmatpush3.bf16.msra.mxu1 %v632_v7  ;;  %v636_v7 = vld [vmem:[%s872_s5] sm:$0xff]  }
  0x2c   :  { %608 = vmatprep.subr.bf16.mxu1 %v730_v0  ;;  %599 = vmatpush3.bf16.msra.mxu0 %v634_v5 }
  0x2d   :  { %600 = vmatprep.subr.bf16.mxu0 %v730_v0 }
  0x30   :  { %601 = vmatpush3.bf16.msra.mxu0 %v635_v6 }
  0x31   :  { %602 = vmatprep.subr.bf16.mxu0 %v730_v0 }
  0x34   :  { %603 = vmatpush3.bf16.msra.mxu0 %v636_v7 }
  0xe6   :  { %v134_v9 = vpop.f32.mrf.mxu0 }
  0xe7   :  { %v135_v10 = vadd.f32 %v534_v8, %v134_v9 }
  0xe8   :  { %v582_v11 = vpop.f32.mrf.mxu0 }
  0xe9   :  { %v141_v12 = vmul.f32 0.70710677, %v135_v10  ;;  %v187_v61 = vmul.f32 0.5, %v135_v10 }
  0xea   :  { %v137_v13 = vpop.f32.mrf.mxu0 }
  0xeb   :  { %v147_v14 = vand.u32 2147483647, %v141_v12  ;;  %v138_v15 = vadd.f32 %v534_v8, %v137_v13  ;;  %vm143_vm2 = vcmp.lt.f32.partialorder %v141_v12, 0.0  ;;  %v539_v8 = vld [vmem:[%s871_s4] ss:$0 sm:$0xff] }
  0xec   :  { %v583_v16 = vpop.f32.mrf.mxu0  ;;  %v145_v54 = vsel %vm143_vm2, -1.0, %v732_v53 }
  0xed   :  { %v149_v17 = vmul.f32 0.3275911, %v147_v14  ;;  %v142_v18 = vmul.f32 0.70710677, %v138_v15  ;;  %v173_v23 = vsub.f32 0.0, %v147_v14  ;;  %v188_v62 = vmul.f32 0.5, %v138_v15 }
  0xef   :  { %v151_v19 = vadd.f32 1.0, %v149_v17  ;;  %v148_v20 = vand.u32 2147483647, %v142_v18  ;;  %v175_v24 = vmul.f32 %v173_v23, %v147_v14  ;;  %vm144_vm3 = vcmp.lt.f32.partialorder %v142_v18, 0.0 }
  0xf0   :  { %v146_v58 = vsel %vm144_vm3, -1.0, %v732_v53 }
  0xf1   :  { %640 = vrcp.f32 %v151_v19  ;;  %v150_v21 = vmul.f32 0.3275911, %v148_v20  ;;  %v174_v25 = vsub.f32 0.0, %v148_v20  ;;  %v177_v28 = vmul.f32 1.442695, %v175_v24 }
  0xf3   :  { %v152_v22 = vadd.f32 1.0, %v150_v21  ;;  %v176_v29 = vmul.f32 %v174_v25, %v148_v20 }
  0xf5   :  { %642 = vrcp.f32 %v152_v22  ;;  %v179_v34 = vmul.f32 1.442695, %v176_v29 }
  0xf6   :  { %644 = vpow2.f32 %v177_v28 }
  0xf7   :  { %646 = vpow2.f32 %v179_v34 }
  0xfe   :  { %v641_v26 = vpop.eup %640 }
  0xff   :  { %v155_v27 = vmul.f32 1.0614054, %v641_v26 }
 0x101   :  { %v157_v30 = vadd.f32 -1.4531521, %v155_v27 }
 0x102   :  { %v643_v31 = vpop.eup %642 }
 0x103   :  { %v159_v32 = vmul.f32 %v641_v26, %v157_v30  ;;  %v156_v33 = vmul.f32 1.0614054, %v643_v31  ;;  %v645_v47 = vpop.eup %644 }
 0x104   :  { %v647_v52 = vpop.eup %646 }
 0x105   :  { %v161_v35 = vadd.f32 1.4214138, %v159_v32  ;;  %v158_v36 = vadd.f32 -1.4531521, %v156_v33 }
 0x107   :  { %v163_v37 = vmul.f32 %v641_v26, %v161_v35  ;;  %v160_v38 = vmul.f32 %v643_v31, %v158_v36 }
 0x109   :  { %v165_v39 = vadd.f32 -0.28449672, %v163_v37  ;;  %v162_v40 = vadd.f32 1.4214138, %v160_v38 }
 0x10b   :  { %v167_v41 = vmul.f32 %v641_v26, %v165_v39  ;;  %v164_v42 = vmul.f32 %v643_v31, %v162_v40 }
 0x10d   :  { %v169_v43 = vadd.f32 0.2548296, %v167_v41  ;;  %v166_v44 = vadd.f32 -0.28449672, %v164_v42 }
 0x10f   :  { %v171_v45 = vmul.f32 %v641_v26, %v169_v43  ;;  %v168_v46 = vmul.f32 %v643_v31, %v166_v44 }
 0x111   :  { %v181_v48 = vmul.f32 %v645_v47, %v171_v45  ;;  %v170_v49 = vadd.f32 0.2548296, %v168_v46 }
 0x113   :  { %v183_v50 = vsub.f32 1.0, %v181_v48  ;;  %v172_v51 = vmul.f32 %v643_v31, %v170_v49 }
 0x115   :  { %v185_v55 = vmul.f32 %v183_v50, %v145_v54  ;;  %v182_v56 = vmul.f32 %v647_v52, %v172_v51 }
 0x117   :  { %v184_v57 = vsub.f32 1.0, %v182_v56  ;;  %v189_v59 = vadd.f32 1.0, %v185_v55 }
 0x119   :  { %v186_v60 = vmul.f32 %v184_v57, %v146_v58  ;;  %v191_v1 = vmul.f32 %v189_v59, %v187_v61 }
 0x11b   :  { %v190_v63 = vadd.f32 1.0, %v186_v60 }
 0x11d   :  { %v192_v2 = vmul.f32 %v190_v63, %v188_v62 }
 0x11f   :  { %v193_v3 = vpack.c.bf16 %v192_v2, %v191_v1 }
 0x121   :  { %593 = vmatmul.mubr.msk.bf16.vlgmr.msra.gmra.mxu1 %vm233_vm4, %v193_v3 }
 0x122   :  { %612 = vmatprep.mubr.msk.bf16.mxu1 %vm731_vm0, %v730_v0 }
 0x1e1   :  { %v271_v9 = vpop.f32.mrf.mxu1 }
 0x1e2   :  { %v272_v10 = vadd.f32 %v539_v8, %v271_v9 }
 0x1e3   :  { %v594_v11 = vpop.f32.mrf.mxu1 }
 0x1e4   :  { %v278_v12 = vmul.f32 0.70710677, %v272_v10  ;;  %v324_v61 = vmul.f32 0.5, %v272_v10 }
 0x1e5   :  { %v274_v13 = vpop.f32.mrf.mxu1 }
 0x1e6   :  { %v284_v14 = vand.u32 2147483647, %v278_v12  ;;  %v275_v15 = vadd.f32 %v539_v8, %v274_v13  ;;  %vm280_vm5 = vcmp.lt.f32.partialorder %v278_v12, 0.0 }
 0x1e7   :  { %v595_v16 = vpop.f32.mrf.mxu1  ;;  %v282_v54 = vsel %vm280_vm5, -1.0, %v732_v53 }
 0x1e8   :  { %v286_v17 = vmul.f32 0.3275911, %v284_v14  ;;  %v279_v18 = vmul.f32 0.70710677, %v275_v15  ;;  %v310_v23 = vsub.f32 0.0, %v284_v14  ;;  %v325_v62 = vmul.f32 0.5, %v275_v15 }
 0x1e9   :  { %v638_v15 = vld [vmem:[#allocation6] sm:$0xff]  }
 0x1ea   :  { %v288_v19 = vadd.f32 1.0, %v286_v17  ;;  %v285_v20 = vand.u32 2147483647, %v279_v18  ;;  %v312_v24 = vmul.f32 %v310_v23, %v284_v14  ;;  %vm281_vm6 = vcmp.lt.f32.partialorder %v279_v18, 0.0  ;;  %v637_v14 = vld [vmem:[#allocation6 + $0x8] sm:$0xff]  }
 0x1eb   :  { %v283_v58 = vsel %vm281_vm6, -1.0, %v732_v53  ;;  %609 = vmatpush3.bf16.msra.mxu1 %v637_v14 }
 0x1ec   :  { %648 = vrcp.f32 %v288_v19  ;;  %v287_v21 = vmul.f32 0.3275911, %v285_v20  ;;  %v311_v25 = vsub.f32 0.0, %v285_v20  ;;  %v314_v28 = vmul.f32 1.442695, %v312_v24  ;;  %610 = vmatprep.subr.bf16.mxu1 %v730_v0 }
 0x1ed   :  { %v553_v0 = vld [vmem:[%s875_s8] ss:$0 sm:$0xff] }
 0x1ee   :  { %v289_v22 = vadd.f32 1.0, %v287_v21  ;;  %v313_v29 = vmul.f32 %v311_v25, %v285_v20 }
 0x1ef   :  { %611 = vmatpush3.bf16.msra.mxu1 %v638_v15 }
 0x1f0   :  { %650 = vrcp.f32 %v289_v22  ;;  %v316_v34 = vmul.f32 1.442695, %v313_v29 }
 0x1f1   :  { %652 = vpow2.f32 %v314_v28 }
 0x1f2   :  { %654 = vpow2.f32 %v316_v34 }
 0x1f9   :  { %v649_v26 = vpop.eup %648 }
 0x1fa   :  { %v292_v27 = vmul.f32 1.0614054, %v649_v26 }
 0x1fc   :  { %v294_v30 = vadd.f32 -1.4531521, %v292_v27 }
 0x1fd   :  { %v651_v31 = vpop.eup %650 }
 0x1fe   :  { %v296_v32 = vmul.f32 %v649_v26, %v294_v30  ;;  %v293_v33 = vmul.f32 1.0614054, %v651_v31  ;;  %v653_v47 = vpop.eup %652 }
 0x1ff   :  { %v655_v52 = vpop.eup %654 }
 0x200   :  { %v298_v35 = vadd.f32 1.4214138, %v296_v32  ;;  %v295_v36 = vadd.f32 -1.4531521, %v293_v33 }
 0x202   :  { %v300_v37 = vmul.f32 %v649_v26, %v298_v35  ;;  %v297_v38 = vmul.f32 %v651_v31, %v295_v36 }
 0x204   :  { %v302_v39 = vadd.f32 -0.28449672, %v300_v37  ;;  %v299_v40 = vadd.f32 1.4214138, %v297_v38 }
 0x206   :  { %v304_v41 = vmul.f32 %v649_v26, %v302_v39  ;;  %v301_v42 = vmul.f32 %v651_v31, %v299_v40 }
 0x208   :  { %v306_v43 = vadd.f32 0.2548296, %v304_v41  ;;  %v303_v44 = vadd.f32 -0.28449672, %v301_v42 }
 0x20a   :  { %v308_v45 = vmul.f32 %v649_v26, %v306_v43  ;;  %v305_v46 = vmul.f32 %v651_v31, %v303_v44 }
 0x20c   :  { %v318_v48 = vmul.f32 %v653_v47, %v308_v45  ;;  %v307_v49 = vadd.f32 0.2548296, %v305_v46 }
 0x20e   :  { %v320_v50 = vsub.f32 1.0, %v318_v48  ;;  %v309_v51 = vmul.f32 %v651_v31, %v307_v49 }
 0x210   :  { %v322_v55 = vmul.f32 %v320_v50, %v282_v54  ;;  %v319_v56 = vmul.f32 %v655_v52, %v309_v51 }
 0x212   :  { %v321_v57 = vsub.f32 1.0, %v319_v56  ;;  %v326_v59 = vadd.f32 1.0, %v322_v55 }
 0x214   :  { %v323_v60 = vmul.f32 %v321_v57, %v283_v58  ;;  %v328_v1 = vmul.f32 %v326_v59, %v324_v61 }
 0x216   :  { %v327_v63 = vadd.f32 1.0, %v323_v60 }
 0x218   :  { %v329_v2 = vmul.f32 %v327_v63, %v325_v62 }
 0x21a   :  { %v330_v3 = vpack.c.bf16 %v329_v2, %v328_v1 }
 0x21c   :  { %605 = vmatmul.mubr.msk.bf16.vlgmr.msra.gmra.mxu0 %vm233_vm4, %v330_v3 }
 0x2dc   :  { %v407_v5 = vpop.f32.mrf.mxu0 }
 0x2dd   :  { %v408_v6 = vadd.f32 %v545_v4, %v407_v5 }
 0x2de   :  { %v606_v7 = vpop.f32.mrf.mxu0 }
 0x2df   :  { %v414_v8 = vmul.f32 %v408_v6, %v408_v6 }
 0x2e0   :  { %v410_v9 = vpop.f32.mrf.mxu0 }
 0x2e1   :  { %v411_v53 = vadd.f32 %v545_v4, %v410_v9  ;;  %v416_v11 = vsel %vm96_vm1, %v414_v8, 0.0 }
 0x2e2   :  { %417 = vadd.xlane.f32.xlu0 %v416_v11  ;;  %v607_v10 = vpop.f32.mrf.mxu0 }
 0x2e3   :  { %v415_v12 = vmul.f32 %v411_v53, %v411_v53 }
 0x2e5   :  { %v419_v13 = vsel %vm96_vm1, %v415_v12, 0.0 }
 0x2e6   :  { %420 = vadd.xlane.f32.xlu0 %v419_v13 }
 0x36b   :  { %v418_v16 = vpop.xlane.xlu0 %417 }
 0x36c   :  { %v422_v17 = vmax.f32 %v418_v16, 1e-24 }
 0x36e   :  { %656 = vrsqrt.f32 %v422_v17 }
 0x36f   :  { %v421_v18 = vpop.xlane.xlu0 %420 }
 0x370   :  { %v423_v19 = vmax.f32 %v421_v18, 1e-24 }
 0x372   :  { %658 = vrsqrt.f32 %v423_v19 }
 0x37b   :  { %v657_v20 = vpop.eup %656 }
 0x37c   :  { %v426_v21 = vmul.f32 %v657_v20, %v408_v6 }
 0x37e   :  { %v558_v22 = vpack.c.bf16 %v426_v21, %v426_v21 }
 0x37f   :  { %v659_v23 = vpop.eup %658 }
 0x380   :  { %437 = vst.msk [vmem:[#allocation2] sm:$0xf] %vm436_vm7, %v558_v22  ;;  %v427_v24 = vmul.f32 %v659_v23, %v411_v53 }
 0x382   :  { %v559_v25 = vpack.c.bf16 %v427_v24, %v427_v24 }
 0x384   :  { %438 = vst.msk [vmem:[#allocation2 + $0x4] sm:$0xf] %vm436_vm7, %v559_v25 }
 0x38b   :  { %v639_v26 = vld [vmem:[#allocation2] sm:$0xff]  }
 0x38c   :  { %613 = vmatmul.mubr.msk.bf16.vlgmr.msra.gmra.mxu1 %vm96_vm1, %v639_v26 }
 0x44c   :  { %v507_v27 = vpop.f32.mrf.mxu1 }
 0x44d   :  { %v508_v28 = vadd.f32 %v553_v0, %v507_v27 }
 0x44e   :  { %v614_v29 = vpop.f32.mrf.mxu1 }
 0x44f   :  { %514 = vst [vmem:[#allocation8] sm:$0xff] %v508_v28 }
 0x450   :  { %v510_v30 = vpop.f32.mrf.mxu1 }
 0x451   :  { %v511_v31 = vadd.f32 %v553_v0, %v510_v30 }
 0x452   :  { %v615_v32 = vpop.f32.mrf.mxu1 }
 0x453   :  { %515 = vst [vmem:[#allocation8 + $0x8] sm:$0xff] %v511_v31 }
 0x454   :  { %711 = shalt.err (!%p708_p0)
}
 0x455   :  { %s734_s7 = smov 128   ;;  %s735_s8 = smov 8  }
 0x456   :  { %527 = dma.vmem_to_hbm [thread:$0]  %s522_s0, 256, %s876_s9, [#allocation5], %s734_s7, %s734_s7, %s735_s8  }
 0x457   :  { %724 = dma.done.wait [#allocation5], 256  }
 0x458   :  { %725 = vsyncadd [#allocation5], 4294967040 }
 0x459   :  { %531 = vsyncpa [#allocation4], 1 }
 0x45a   :  { %532 = vsyncpa [#allocation7], 1 }
 0x45b   :  { %533 = vsyncpa [#allocation5], 1 }

// kernel: tpu_custom_call.1
= control target key start
LH: loop header
LB: loop body
LE: loop exit
PB: predicated region body
PF: predicated region fallthrough
CT: control target
= control target key end

     0   :  { %14 = vsyncpa [#allocation4], 0  ;;  %s867_s0 = inlined_call_operand.hbm [shape: bf16[16,32], index: 0, kind: input, shape index: {}]   ;;  %s868_s1 = inlined_call_operand.vmem [shape: bf16[32,64], index: 1, kind: input, shape index: {}]   ;;  %s869_s2 = inlined_call_operand.vmem [shape: f32[1,64], index: 2, kind: input, shape index: {}]   ;;  %s870_s3 = inlined_call_operand.vmem [shape: bf16[64,64], index: 3, kind: input, shape index: {}]   ;;  %s871_s4 = inlined_call_operand.vmem [shape: f32[1,64], index: 4, kind: input, shape index: {}]   ;;  %s872_s5 = inlined_call_operand.vmem [shape: bf16[64,32], index: 5, kind: input, shape index: {}]   ;;  %s873_s6 = inlined_call_operand.vmem [shape: f32[1,32], index: 6, kind: input, shape index: {}]   ;;  %s874_s7 = inlined_call_operand.hbm [shape: bf16[32,128], index: 7, kind: input, shape index: {}]   ;;  %s875_s8 = inlined_call_operand.vmem [shape: f32[1,128], index: 8, kind: input, shape index: {}]   ;;  %s876_s9 = inlined_call_operand.hbm [shape: f32[16,128], index: 9, kind: output, shape index: {}]  }
   0x1   :  { %15 = vsyncpa [#allocation7], 0 }
   0x2   :  { %16 = vsyncpa [#allocation5], 0  ;;  %s726_s30 = smov [#allocation3]  }
   0x3   :  { %s22_s10 = sshll.u32 %s726_s30, 4  ;;  %s23_s10 = int_to_ptr.vmem [resolvable:$true] %s22_s10 }
   0x4   :  { %s668_s11 = scalar_lea.vmem %s23_s10, 128  ;;  %p673_p1 = scmp.lt.s32.totalorder %s23_s10, %s23_s10 }
   0x5   :  { %p669_p0 = scmp.ne.s32.totalorder %s23_s10, %s668_s11  ;;  %p674_p2 = scmp.lt.s32.totalorder %s668_s11, %s668_s11 }
   0x7   :  { %p675_p3 = por %p674_p2, %p673_p1 }
   0x9   :  { %p676_p4 = pnand %p675_p3, %p669_p0 }
   0xb   :  { %679 = shalt.err (!%p676_p4)
}
   0xc   :  { %s727_s12 = smov 64   ;;  %s728_s13 = smov 4  }
   0xd   :  { %28 = dma.hbm_to_vmem [thread:$0]  %s867_s0, 128, %s23_s10, [#allocation4], %s727_s12, %s727_s12, %s728_s13  }
   0xe   :  { %s729_s16 = smov [#allocation6]  }
   0xf   :  { %s46_s17 = sshll.u32 %s729_s16, 4  ;;  %s47_s17 = int_to_ptr.vmem [resolvable:$true] %s46_s17 }
  0x10   :  { %s688_s18 = scalar_lea.vmem %s47_s17, 256  ;;  %p693_p6 = scmp.lt.s32.totalorder %s47_s17, %s47_s17 }
  0x11   :  { %p689_p5 = scmp.ne.s32.totalorder %s47_s17, %s688_s18  ;;  %p694_p7 = scmp.lt.s32.totalorder %s688_s18, %s688_s18 }
  0x13   :  { %p695_p8 = por %p694_p7, %p693_p6 }
  0x15   :  { %p696_p9 = pnand %p695_p8, %p689_p5 }
  0x17   :  { %699 = shalt.err (!%p696_p9)
}
  0x18   :  { %52 = dma.hbm_to_vmem [thread:$0]  %s874_s7, 256, %s47_s17, [#allocation7], %s727_s12, %s727_s12, %s728_s13  }
  0x19   :  { %720 = dma.done.wait [#allocation4], 128  }
  0x1a   :  { %721 = vsyncadd [#allocation4], 4294967168 }
  0x1b   :  { %722 = dma.done.wait [#allocation7], 256  }
  0x1c   :  { %723 = vsyncadd [#allocation7], 4294967040  ;;  %v730_v0 = vmov 0.0   ;;  %vm731_vm0 = vmmov 0   ;;  %v626_v1 = vld [vmem:[%s868_s1 + $0x8] sm:$0xff]   ;;  %v627_v2 = vld [vmem:[%s868_s1] sm:$0xff]  }
  0x1d   :  { %576 = vmatprep.subr.bf16.mxu0 %v730_v0  ;;  %580 = vmatprep.mubr.msk.bf16.mxu0 %vm731_vm0, %v730_v0  ;;  %v628_v3 = vld [vmem:[#allocation3] sm:$0xff]   ;;  %vm96_vm1 = vcmask 261120   ;;  %v629_v4 = vld [vmem:[%s870_s3 + $0x18] sm:$0xff]   ;;  %v630_v5 = vld [vmem:[%s870_s3 + $0x10] sm:$0xff]   ;;  %v732_v53 = vmov 1.0   ;;  %vm233_vm4 = vcmask 523264  }
  0x1e   :  { %584 = vmatprep.subr.bf16.mxu1 %v730_v0  ;;  %592 = vmatprep.mubr.msk.bf16.mxu1 %vm731_vm0, %v730_v0  ;;  %v631_v6 = vld [vmem:[%s870_s3 + $0x8] sm:$0xff]   ;;  %v632_v7 = vld [vmem:[%s870_s3] sm:$0xff]   ;;  %vm436_vm7 = vcmask 257024   ;;  %s733_s20 = smov [#allocation8]  }
  0x1f   :  { %577 = vmatpush3.bf16.msra.mxu0 %v626_v1  ;;  %585 = vmatpush3.bf16.msra.mxu1 %v629_v4  ;;  %v534_v8 = vld [vmem:[%s869_s2] ss:$0 sm:$0xff]  ;;  %v633_v4 = vld [vmem:[%s872_s5 + $0x18] sm:$0xff]   ;;  %s521_s0 = sshll.u32 %s733_s20, 4  ;;  %s522_s0 = int_to_ptr.vmem [resolvable:$true] %s521_s0 }
  0x20   :  { %578 = vmatprep.subr.bf16.mxu0 %v730_v0  ;;  %586 = vmatprep.subr.bf16.mxu1 %v730_v0  ;;  %s700_s21 = scalar_lea.vmem %s522_s0, 256  ;;  %p705_p11 = scmp.lt.s32.totalorder %s522_s0, %s522_s0 }
  0x21   :  { %p701_p10 = scmp.ne.s32.totalorder %s522_s0, %s700_s21  ;;  %p706_p12 = scmp.lt.s32.totalorder %s700_s21, %s700_s21 }
  0x23   :  { %579 = vmatpush3.bf16.msra.mxu0 %v627_v2  ;;  %587 = vmatpush3.bf16.msra.mxu1 %v630_v5  ;;  %v634_v5 = vld [vmem:[%s872_s5 + $0x10] sm:$0xff]   ;;  %p707_p13 = por %p706_p12, %p705_p11 }
  0x24   :  { %596 = vmatprep.subr.bf16.mxu0 %v730_v0  ;;  %588 = vmatprep.subr.bf16.mxu1 %v730_v0 }
  0x25   :  { %p708_p0 = pnand %p707_p13, %p701_p10 }
  0x26   :  { %581 = vmatmul.mubr.msk.bf16.vlgmr.msra.gmra.mxu0 %vm96_vm1, %v628_v3 }
  0x27   :  { %604 = vmatprep.mubr.msk.bf16.mxu0 %vm731_vm0, %v730_v0  ;;  %589 = vmatpush3.bf16.msra.mxu1 %v631_v6  ;;  %v635_v6 = vld [vmem:[%s872_s5 + $0x8] sm:$0xff]  }
  0x28   :  { %590 = vmatprep.subr.bf16.mxu1 %v730_v0  ;;  %597 = vmatpush3.bf16.msra.mxu0 %v633_v4  ;;  %v545_v4 = vld [vmem:[%s873_s6] ss:$0 sm:$0xff] }
  0x29   :  { %598 = vmatprep.subr.bf16.mxu0 %v730_v0 }
  0x2b   :  { %591 = vmatpush3.bf16.msra.mxu1 %v632_v7  ;;  %v636_v7 = vld [vmem:[%s872_s5] sm:$0xff]  }
  0x2c   :  { %608 = vmatprep.subr.bf16.mxu1 %v730_v0  ;;  %599 = vmatpush3.bf16.msra.mxu0 %v634_v5 }
  0x2d   :  { %600 = vmatprep.subr.bf16.mxu0 %v730_v0 }
  0x30   :  { %601 = vmatpush3.bf16.msra.mxu0 %v635_v6 }
  0x31   :  { %602 = vmatprep.subr.bf16.mxu0 %v730_v0 }
  0x34   :  { %603 = vmatpush3.bf16.msra.mxu0 %v636_v7 }
  0xe6   :  { %v134_v9 = vpop.f32.mrf.mxu0 }
  0xe7   :  { %v135_v10 = vadd.f32 %v534_v8, %v134_v9 }
  0xe8   :  { %v582_v11 = vpop.f32.mrf.mxu0 }
  0xe9   :  { %v141_v12 = vmul.f32 0.70710677, %v135_v10  ;;  %v187_v61 = vmul.f32 0.5, %v135_v10 }
  0xea   :  { %v137_v13 = vpop.f32.mrf.mxu0 }
  0xeb   :  { %v147_v14 = vand.u32 2147483647, %v141_v12  ;;  %v138_v15 = vadd.f32 %v534_v8, %v137_v13  ;;  %vm143_vm2 = vcmp.lt.f32.partialorder %v141_v12, 0.0  ;;  %v539_v8 = vld [vmem:[%s871_s4] ss:$0 sm:$0xff] }
  0xec   :  { %v583_v16 = vpop.f32.mrf.mxu0  ;;  %v145_v54 = vsel %vm143_vm2, -1.0, %v732_v53 }
  0xed   :  { %v149_v17 = vmul.f32 0.3275911, %v147_v14  ;;  %v142_v18 = vmul.f32 0.70710677, %v138_v15  ;;  %v173_v23 = vsub.f32 0.0, %v147_v14  ;;  %v188_v62 = vmul.f32 0.5, %v138_v15 }
  0xef   :  { %v151_v19 = vadd.f32 1.0, %v149_v17  ;;  %v148_v20 = vand.u32 2147483647, %v142_v18  ;;  %v175_v24 = vmul.f32 %v173_v23, %v147_v14  ;;  %vm144_vm3 = vcmp.lt.f32.partialorder %v142_v18, 0.0 }
  0xf0   :  { %v146_v58 = vsel %vm144_vm3, -1.0, %v732_v53 }
  0xf1   :  { %640 = vrcp.f32 %v151_v19  ;;  %v150_v21 = vmul.f32 0.3275911, %v148_v20  ;;  %v174_v25 = vsub.f32 0.0, %v148_v20  ;;  %v177_v28 = vmul.f32 1.442695, %v175_v24 }
  0xf3   :  { %v152_v22 = vadd.f32 1.0, %v150_v21  ;;  %v176_v29 = vmul.f32 %v174_v25, %v148_v20 }
  0xf5   :  { %642 = vrcp.f32 %v152_v22  ;;  %v179_v34 = vmul.f32 1.442695, %v176_v29 }
  0xf6   :  { %644 = vpow2.f32 %v177_v28 }
  0xf7   :  { %646 = vpow2.f32 %v179_v34 }
  0xfe   :  { %v641_v26 = vpop.eup %640 }
  0xff   :  { %v155_v27 = vmul.f32 1.0614054, %v641_v26 }
 0x101   :  { %v157_v30 = vadd.f32 -1.4531521, %v155_v27 }
 0x102   :  { %v643_v31 = vpop.eup %642 }
 0x103   :  { %v159_v32 = vmul.f32 %v641_v26, %v157_v30  ;;  %v156_v33 = vmul.f32 1.0614054, %v643_v31  ;;  %v645_v47 = vpop.eup %644 }
 0x104   :  { %v647_v52 = vpop.eup %646 }
 0x105   :  { %v161_v35 = vadd.f32 1.4214138, %v159_v32  ;;  %v158_v36 = vadd.f32 -1.4531521, %v156_v33 }
 0x107   :  { %v163_v37 = vmul.f32 %v641_v26, %v161_v35  ;;  %v160_v38 = vmul.f32 %v643_v31, %v158_v36 }
 0x109   :  { %v165_v39 = vadd.f32 -0.28449672, %v163_v37  ;;  %v162_v40 = vadd.f32 1.4214138, %v160_v38 }
 0x10b   :  { %v167_v41 = vmul.f32 %v641_v26, %v165_v39  ;;  %v164_v42 = vmul.f32 %v643_v31, %v162_v40 }
 0x10d   :  { %v169_v43 = vadd.f32 0.2548296, %v167_v41  ;;  %v166_v44 = vadd.f32 -0.28449672, %v164_v42 }
 0x10f   :  { %v171_v45 = vmul.f32 %v641_v26, %v169_v43  ;;  %v168_v46 = vmul.f32 %v643_v31, %v166_v44 }
 0x111   :  { %v181_v48 = vmul.f32 %v645_v47, %v171_v45  ;;  %v170_v49 = vadd.f32 0.2548296, %v168_v46 }
 0x113   :  { %v183_v50 = vsub.f32 1.0, %v181_v48  ;;  %v172_v51 = vmul.f32 %v643_v31, %v170_v49 }
 0x115   :  { %v185_v55 = vmul.f32 %v183_v50, %v145_v54  ;;  %v182_v56 = vmul.f32 %v647_v52, %v172_v51 }
 0x117   :  { %v184_v57 = vsub.f32 1.0, %v182_v56  ;;  %v189_v59 = vadd.f32 1.0, %v185_v55 }
 0x119   :  { %v186_v60 = vmul.f32 %v184_v57, %v146_v58  ;;  %v191_v1 = vmul.f32 %v189_v59, %v187_v61 }
 0x11b   :  { %v190_v63 = vadd.f32 1.0, %v186_v60 }
 0x11d   :  { %v192_v2 = vmul.f32 %v190_v63, %v188_v62 }
 0x11f   :  { %v193_v3 = vpack.c.bf16 %v192_v2, %v191_v1 }
 0x121   :  { %593 = vmatmul.mubr.msk.bf16.vlgmr.msra.gmra.mxu1 %vm233_vm4, %v193_v3 }
 0x122   :  { %612 = vmatprep.mubr.msk.bf16.mxu1 %vm731_vm0, %v730_v0 }
 0x1e1   :  { %v271_v9 = vpop.f32.mrf.mxu1 }
 0x1e2   :  { %v272_v10 = vadd.f32 %v539_v8, %v271_v9 }
 0x1e3   :  { %v594_v11 = vpop.f32.mrf.mxu1 }
 0x1e4   :  { %v278_v12 = vmul.f32 0.70710677, %v272_v10  ;;  %v324_v61 = vmul.f32 0.5, %v272_v10 }
 0x1e5   :  { %v274_v13 = vpop.f32.mrf.mxu1 }
 0x1e6   :  { %v284_v14 = vand.u32 2147483647, %v278_v12  ;;  %v275_v15 = vadd.f32 %v539_v8, %v274_v13  ;;  %vm280_vm5 = vcmp.lt.f32.partialorder %v278_v12, 0.0 }
 0x1e7   :  { %v595_v16 = vpop.f32.mrf.mxu1  ;;  %v282_v54 = vsel %vm280_vm5, -1.0, %v732_v53 }
 0x1e8   :  { %v286_v17 = vmul.f32 0.3275911, %v284_v14  ;;  %v279_v18 = vmul.f32 0.70710677, %v275_v15  ;;  %v310_v23 = vsub.f32 0.0, %v284_v14  ;;  %v325_v62 = vmul.f32 0.5, %v275_v15 }
 0x1e9   :  { %v638_v15 = vld [vmem:[#allocation6] sm:$0xff]  }
 0x1ea   :  { %v288_v19 = vadd.f32 1.0, %v286_v17  ;;  %v285_v20 = vand.u32 2147483647, %v279_v18  ;;  %v312_v24 = vmul.f32 %v310_v23, %v284_v14  ;;  %vm281_vm6 = vcmp.lt.f32.partialorder %v279_v18, 0.0  ;;  %v637_v14 = vld [vmem:[#allocation6 + $0x8] sm:$0xff]  }
 0x1eb   :  { %v283_v58 = vsel %vm281_vm6, -1.0, %v732_v53  ;;  %609 = vmatpush3.bf16.msra.mxu1 %v637_v14 }
 0x1ec   :  { %648 = vrcp.f32 %v288_v19  ;;  %v287_v21 = vmul.f32 0.3275911, %v285_v20  ;;  %v311_v25 = vsub.f32 0.0, %v285_v20  ;;  %v314_v28 = vmul.f32 1.442695, %v312_v24  ;;  %610 = vmatprep.subr.bf16.mxu1 %v730_v0 }
 0x1ed   :  { %v553_v0 = vld [vmem:[%s875_s8] ss:$0 sm:$0xff] }
 0x1ee   :  { %v289_v22 = vadd.f32 1.0, %v287_v21  ;;  %v313_v29 = vmul.f32 %v311_v25, %v285_v20 }
 0x1ef   :  { %611 = vmatpush3.bf16.msra.mxu1 %v638_v15 }
 0x1f0   :  { %650 = vrcp.f32 %v289_v22  ;;  %v316_v34 = vmul.f32 1.442695, %v313_v29 }
 0x1f1   :  { %652 = vpow2.f32 %v314_v28 }
 0x1f2   :  { %654 = vpow2.f32 %v316_v34 }
 0x1f9   :  { %v649_v26 = vpop.eup %648 }
 0x1fa   :  { %v292_v27 = vmul.f32 1.0614054, %v649_v26 }
 0x1fc   :  { %v294_v30 = vadd.f32 -1.4531521, %v292_v27 }
 0x1fd   :  { %v651_v31 = vpop.eup %650 }
 0x1fe   :  { %v296_v32 = vmul.f32 %v649_v26, %v294_v30  ;;  %v293_v33 = vmul.f32 1.0614054, %v651_v31  ;;  %v653_v47 = vpop.eup %652 }
 0x1ff   :  { %v655_v52 = vpop.eup %654 }
 0x200   :  { %v298_v35 = vadd.f32 1.4214138, %v296_v32  ;;  %v295_v36 = vadd.f32 -1.4531521, %v293_v33 }
 0x202   :  { %v300_v37 = vmul.f32 %v649_v26, %v298_v35  ;;  %v297_v38 = vmul.f32 %v651_v31, %v295_v36 }
 0x204   :  { %v302_v39 = vadd.f32 -0.28449672, %v300_v37  ;;  %v299_v40 = vadd.f32 1.4214138, %v297_v38 }
 0x206   :  { %v304_v41 = vmul.f32 %v649_v26, %v302_v39  ;;  %v301_v42 = vmul.f32 %v651_v31, %v299_v40 }
 0x208   :  { %v306_v43 = vadd.f32 0.2548296, %v304_v41  ;;  %v303_v44 = vadd.f32 -0.28449672, %v301_v42 }
 0x20a   :  { %v308_v45 = vmul.f32 %v649_v26, %v306_v43  ;;  %v305_v46 = vmul.f32 %v651_v31, %v303_v44 }
 0x20c   :  { %v318_v48 = vmul.f32 %v653_v47, %v308_v45  ;;  %v307_v49 = vadd.f32 0.2548296, %v305_v46 }
 0x20e   :  { %v320_v50 = vsub.f32 1.0, %v318_v48  ;;  %v309_v51 = vmul.f32 %v651_v31, %v307_v49 }
 0x210   :  { %v322_v55 = vmul.f32 %v320_v50, %v282_v54  ;;  %v319_v56 = vmul.f32 %v655_v52, %v309_v51 }
 0x212   :  { %v321_v57 = vsub.f32 1.0, %v319_v56  ;;  %v326_v59 = vadd.f32 1.0, %v322_v55 }
 0x214   :  { %v323_v60 = vmul.f32 %v321_v57, %v283_v58  ;;  %v328_v1 = vmul.f32 %v326_v59, %v324_v61 }
 0x216   :  { %v327_v63 = vadd.f32 1.0, %v323_v60 }
 0x218   :  { %v329_v2 = vmul.f32 %v327_v63, %v325_v62 }
 0x21a   :  { %v330_v3 = vpack.c.bf16 %v329_v2, %v328_v1 }
 0x21c   :  { %605 = vmatmul.mubr.msk.bf16.vlgmr.msra.gmra.mxu0 %vm233_vm4, %v330_v3 }
 0x2dc   :  { %v407_v5 = vpop.f32.mrf.mxu0 }
 0x2dd   :  { %v408_v6 = vadd.f32 %v545_v4, %v407_v5 }
 0x2de   :  { %v606_v7 = vpop.f32.mrf.mxu0 }
 0x2df   :  { %v414_v8 = vmul.f32 %v408_v6, %v408_v6 }
 0x2e0   :  { %v410_v9 = vpop.f32.mrf.mxu0 }
 0x2e1   :  { %v411_v53 = vadd.f32 %v545_v4, %v410_v9  ;;  %v416_v11 = vsel %vm96_vm1, %v414_v8, 0.0 }
 0x2e2   :  { %417 = vadd.xlane.f32.xlu0 %v416_v11  ;;  %v607_v10 = vpop.f32.mrf.mxu0 }
 0x2e3   :  { %v415_v12 = vmul.f32 %v411_v53, %v411_v53 }
 0x2e5   :  { %v419_v13 = vsel %vm96_vm1, %v415_v12, 0.0 }
 0x2e6   :  { %420 = vadd.xlane.f32.xlu0 %v419_v13 }
 0x36b   :  { %v418_v16 = vpop.xlane.xlu0 %417 }
 0x36c   :  { %v422_v17 = vmax.f32 %v418_v16, 1e-24 }
 0x36e   :  { %656 = vrsqrt.f32 %v422_v17 }
 0x36f   :  { %v421_v18 = vpop.xlane.xlu0 %420 }
 0x370   :  { %v423_v19 = vmax.f32 %v421_v18, 1e-24 }
 0x372   :  { %658 = vrsqrt.f32 %v423_v19 }
 0x37b   :  { %v657_v20 = vpop.eup %656 }
 0x37c   :  { %v426_v21 = vmul.f32 %v657_v20, %v408_v6 }
 0x37e   :  { %v558_v22 = vpack.c.bf16 %v426_v21, %v426_v21 }
 0x37f   :  { %v659_v23 = vpop.eup %658 }
 0x380   :  { %437 = vst.msk [vmem:[#allocation2] sm:$0xf] %vm436_vm7, %v558_v22  ;;  %v427_v24 = vmul.f32 %v659_v23, %v411_v53 }
 0x382   :  { %v559_v25 = vpack.c.bf16 %v427_v24, %v427_v24 }
 0x384   :  { %438 = vst.msk [vmem:[#allocation2 + $0x4] sm:$0xf] %vm436_vm7, %v559_v25 }
 0x38b   :  { %v639_v26 = vld [vmem:[#allocation2] sm:$0xff]  }
 0x38c   :  { %613 = vmatmul.mubr.msk.bf16.vlgmr.msra.gmra.mxu1 %vm96_vm1, %v639_v26 }
 0x44c   :  { %v507_v27 = vpop.f32.mrf.mxu1 }
 0x44d   :  { %v508_v28 = vadd.f32 %v553_v0, %v507_v27 }
 0x44e   :  { %v614_v29 = vpop.f32.mrf.mxu1 }
 0x44f   :  { %514 = vst [vmem:[#allocation8] sm:$0xff] %v508_v28 }
 0x450   :  { %v510_v30 = vpop.f32.mrf.mxu1 }
 0x451   :  { %v511_v31 = vadd.f32 %v553_v0, %v510_v30 }
 0x452   :  { %v615_v32 = vpop.f32.mrf.mxu1 }
 0x453   :  { %515 = vst [vmem:[#allocation8 + $0x8] sm:$0xff] %v511_v31 }
 0x454   :  { %711 = shalt.err (!%p708_p0)
}
 0x455   :  { %s734_s7 = smov 128   ;;  %s735_s8 = smov 8  }
 0x456   :  { %527 = dma.vmem_to_hbm [thread:$0]  %s522_s0, 256, %s876_s9, [#allocation5], %s734_s7, %s734_s7, %s735_s8  }
 0x457   :  { %724 = dma.done.wait [#allocation5], 256  }
 0x458   :  { %725 = vsyncadd [#allocation5], 4294967040 }
 0x459   :  { %531 = vsyncpa [#allocation4], 1 }
 0x45a   :  { %532 = vsyncpa [#allocation7], 1 }
 0x45b   :  { %533 = vsyncpa [#allocation5], 1 }

</bundles_post_ra>
